<compile_context>
chip_gen: v5e
topology: v5e:2x2
jax: 0.10.0
libtpu: 0.0.40
codegen_flags: <defaults>
</compile_context>

<pallas_src>
import functools
import math

import jax
import jax.numpy as jnp
from jax.experimental import pallas as pl
from jax.experimental.pallas import tpu as pltpu

LN_EPS = 1e-5       # torch.nn.LayerNorm default
ATTN_EPS = 1e-6     # MAT adjacency-normalization eps (forward default)
NEG_INF = 1e12      # MAT "inf" default used for masking


# ---------------------------------------------------------------------------
# TPU-generation-aware tiling helpers
# ---------------------------------------------------------------------------
def _round_up(x, m):
    return ((x + m - 1) // m) * m


def _sublane_quantum(dtype):
    # packed-sublane minimum for the second-to-last block dim: 8 (f32) / 16 (bf16) / 32 (8-bit)
    return {4: 8, 2: 16, 1: 32}.get(jnp.dtype(dtype).itemsize, 8)


def _chip_config():
    """(row-tile VMEM budget, scoped-vmem cap, min parallel grid steps) per TPU generation."""
    try:
        phys = int(getattr(pltpu.get_tpu_info(), "vmem_capacity_bytes"))
    except Exception:
        phys = 64 * 1024 * 1024                      # assume most constrained (v7x-like)
    if phys <= 64 * 1024 * 1024:
        # v7x: 64 MiB VMEM per TensorCore, 2 TCs/chip -> leave headroom, keep >=2 steps
        return 40 * 1024 * 1024, 56 * 1024 * 1024, 2
    # v5e / v6e: 128 MiB VMEM, single TensorCore -> big tiles, no extra-step clamp
    return 96 * 1024 * 1024, 112 * 1024 * 1024, 1


def _vmem_limit(estimate):
    _, cap, _ = _chip_config()
    return int(min(cap, max(16 * 1024 * 1024, int(estimate * 1.5))))


def _linear_vmem_estimate(t, k, n, itemsize):
    # double-buffered x / residual / out row blocks, double-buffered weight+bias+LN blocks,
    # plus f32 epilogue temporaries.
    blocks = 2 * (t * k + 2 * t * n) * itemsize + 2 * (k * n + 3 * n) * itemsize
    temps = 4 * t * n * 4
    return blocks + temps


def _pick_tile_rows(m, k, n, dtype, target=1024):
    """Largest dtype-aligned row tile that fits the generation-specific VMEM budget."""
    q = _sublane_quantum(dtype)
    itemsize = jnp.dtype(dtype).itemsize
    budget, _, min_steps = _chip_config()
    t = min(_round_up(target, q), _round_up(m, q))
    if min_steps > 1:        # v7x megacore: keep at least `min_steps` parallel grid steps
        t = min(t, max(q, _round_up(pl.cdiv(m, min_steps), q)))
    while t > q and _linear_vmem_estimate(t, k, n, itemsize) > budget:
        t = max(q, _round_up(t // 2, q))
    return t


# ---------------------------------------------------------------------------
# kernels
# ---------------------------------------------------------------------------
def _mat_attention_kernel(x_ref, w_ref, b_ref, mask_ref, adj_ref, dist_ref, o_ref, *,
                          h, d_k, scale, lam_att, lam_dist, lam_adj, eps, neg_inf):
    # Fused shared Q/K/V projection (q == k == v: the torch module reuses one nn.Linear
    # and is called with (x, x, x)) + all attention heads for one molecule.
    qkv = jnp.dot(x_ref[0], w_ref[...], preferred_element_type=jnp.float32) + b_ref[...]

    key_mask = mask_ref[0].astype(jnp.float32)                 # (1, S); 1.0 = valid atom
    add_mask = jnp.where(key_mask == 0.0, -neg_inf, 0.0)       # hoisted additive key mask

    # --- head-invariant terms: computed once per molecule, not once per head ---
    adj = adj_ref[0].astype(jnp.float32)                       # (S, S)
    p_adj = adj * pl.reciprocal(jnp.sum(adj, axis=-1, keepdims=True) + eps, approx=False)

    dist = dist_ref[0].astype(jnp.float32)
    neg = add_mask - dist                                      # softmax(-dist), keys masked
    dmax = jnp.max(neg, axis=-1, keepdims=True)
    dexp = jnp.exp(neg - dmax)
    p_dist = dexp * pl.reciprocal(jnp.sum(dexp, axis=-1, keepdims=True), approx=False)

    p_const = lam_dist * p_dist + lam_adj * p_adj              # (S, S), head-invariant

    # --- per-head attention: unrolled loop keeps the tiny MXU matmuls back-to-back ---
    outs = []
    for hi in range(h):
        q = qkv[:, hi * d_k:(hi + 1) * d_k]                    # (S, d_k); q == k == v
        scores = jax.lax.dot_general(q, q, (((1,), (1,)), ((), ())),
                                     preferred_element_type=jnp.float32) * scale
        scores = scores + add_mask
        smax = jnp.max(scores, axis=-1, keepdims=True)
        sexp = jnp.exp(scores - smax)
        p_attn = sexp * pl.reciprocal(jnp.sum(sexp, axis=-1, keepdims=True), approx=False)
        p = lam_att * p_attn + p_const
        # TODO(synk): dropout_p == 0.0 everywhere in the module defaults -> identity.
        outs.append(jnp.dot(p, q, preferred_element_type=jnp.float32))

    # single lane-dense (S, h*d_k) store; head-concat order matches the torch
    # transpose(1,2).contiguous().view(B, -1, h*d_k) layout.
    o_ref[0] = jnp.concatenate(outs, axis=-1).astype(o_ref.dtype)


def _linear_act_ln_res_kernel(x_ref, w_ref, b_ref, res_ref, g_ref, be_ref, o_ref,
                              *, negative_slope, eps):
    # out = residual + LayerNorm(act(x @ W^T + b));  dropout_p == 0.0 -> identity
    y = jnp.dot(x_ref[...], w_ref[...], preferred_element_type=jnp.float32)
    y = y + b_ref[...]
    if negative_slope is not None:                             # LeakyReLU(0.1)
        y = jnp.where(y >= 0, y, negative_slope * y)
    mean = jnp.mean(y, axis=-1, keepdims=True)
    centered = y - mean
    var = jnp.mean(centered * centered, axis=-1, keepdims=True)   # biased, like torch LN
    normed = centered * jax.lax.rsqrt(var + eps) * g_ref[...] + be_ref[...]
    o_ref[...] = (res_ref[...].astype(jnp.float32) + normed).astype(o_ref.dtype)


# ---------------------------------------------------------------------------
# pallas_call wrappers
# ---------------------------------------------------------------------------
def _pallas_mat_attention(x, w_in_t, b_in, mask, adj, dist, *, h, lam_att, lam_dist):
    b, s, hidden = x.shape
    d_k = hidden // h
    lam_adj = 1.0 - lam_att - lam_dist
    mask3 = mask.reshape(b, 1, s)                  # native dtype; cast inside the kernel
    itemsize = jnp.dtype(x.dtype).itemsize
    est = (2 * (2 * s * hidden + hidden * hidden + hidden) * itemsize
           + 2 * s * jnp.dtype(mask.dtype).itemsize
           + 2 * s * s * (jnp.dtype(adj.dtype).itemsize + jnp.dtype(dist.dtype).itemsize)
           + (2 * s * hidden + 8 * s * s) * 4)
    kern = functools.partial(
        _mat_attention_kernel, h=h, d_k=d_k, scale=1.0 / math.sqrt(d_k),
        lam_att=lam_att, lam_dist=lam_dist, lam_adj=lam_adj,
        eps=ATTN_EPS, neg_inf=NEG_INF)
    # TODO(synk): if B == 1 on v7x, a second parallel axis over query-row tiles would be
    # needed to keep both TensorCores busy; typical MAT batches have B >= 2.
    return pl.pallas_call(
        kern,
        out_shape=jax.ShapeDtypeStruct((b, s, hidden), x.dtype),
        grid_spec=pltpu.PrefetchScalarGridSpec(
            num_scalar_prefetch=0,
            grid=(b,),                              # one molecule per step; heads in-kernel
            in_specs=[
                pl.BlockSpec((1, s, hidden), lambda bi: (bi, 0, 0)),   # x
                pl.BlockSpec((hidden, hidden), lambda bi: (0, 0)),     # W_in^T (resident)
                pl.BlockSpec((1, hidden), lambda bi: (0, 0)),          # b_in
                pl.BlockSpec((1, 1, s), lambda bi: (bi, 0, 0)),        # mask (native dtype)
                pl.BlockSpec((1, s, s), lambda bi: (bi, 0, 0)),        # adjacency
                pl.BlockSpec((1, s, s), lambda bi: (bi, 0, 0)),        # distance
            ],
            out_specs=pl.BlockSpec((1, s, hidden), lambda bi: (bi, 0, 0)),
        ),
        compiler_params=pltpu.CompilerParams(
            dimension_semantics=("parallel",),
            vmem_limit_bytes=_vmem_limit(est)),
    )(x, w_in_t, b_in.reshape(1, hidden), mask3, adj, dist)


def _pallas_linear_ln_residual(x, w_t, b, residual, gamma, beta, *,
                               negative_slope=None, tile_rows=None):
    m, k = x.shape
    n = w_t.shape[1]
    t = tile_rows or _pick_tile_rows(m, k, n, x.dtype)
    est = _linear_vmem_estimate(t, k, n, jnp.dtype(x.dtype).itemsize)
    kern = functools.partial(_linear_act_ln_res_kernel,
                             negative_slope=negative_slope, eps=LN_EPS)
    # Ragged last row-block is handled by Pallas (rows are independent), so no jnp.pad
    # and no trailing slice -> no extra HBM passes over the activations.
    return pl.pallas_call(
        kern,
        out_shape=jax.ShapeDtypeStruct((m, n), x.dtype),
        grid_spec=pltpu.PrefetchScalarGridSpec(
            num_scalar_prefetch=0,
            grid=(pl.cdiv(m, t),),
            in_specs=[
                pl.BlockSpec((t, k), lambda i: (i, 0)),    # x rows
                # TODO(synk): pipeline_mode=pl.Buffered(1) would single-buffer these
                # constant-index blocks; left default-buffered for lowering portability.
                pl.BlockSpec((k, n), lambda i: (0, 0)),    # W^T (resident)
                pl.BlockSpec((1, n), lambda i: (0, 0)),    # bias
                pl.BlockSpec((t, n), lambda i: (i, 0)),    # residual rows
                pl.BlockSpec((1, n), lambda i: (0, 0)),    # LN gamma
                pl.BlockSpec((1, n), lambda i: (0, 0)),    # LN beta
            ],
            out_specs=pl.BlockSpec((t, n), lambda i: (i, 0)),
        ),
        compiler_params=pltpu.CompilerParams(
            dimension_semantics=("parallel",),
            vmem_limit_bytes=_vmem_limit(est)),
    )(x, w_t, b.reshape(1, n), residual, gamma.reshape(1, n), beta.reshape(1, n))


# ---------------------------------------------------------------------------
# full encoder layer
# ---------------------------------------------------------------------------
def mat_encoder_layer(x, mask, adj, dist, params, *, h,
                      lambda_attention=0.33, lambda_distance=0.33):
    b, s, hidden = x.shape
    assert hidden % h == 0, "hidden size must be divisible by number of heads"
    rows = b * s

    # 1+2) fused shared Q/K/V projection + MAT attention; lane-dense (B, S, hidden) output
    att = _pallas_mat_attention(x, params["w_in_t"], params["b_in"], mask, adj, dist,
                                h=h, lam_att=lambda_attention, lam_dist=lambda_distance)

    x2 = x.reshape(rows, hidden)        # contiguous reshapes only (no HBM transposes)
    att2 = att.reshape(rows, hidden)

    # 3) output projection fused with SublayerConnection[0]: x1 = x + LN(att @ Wo^T + bo)
    x1 = _pallas_linear_ln_residual(att2, params["w_out_t"], params["b_out"],
                                    x2, params["ln_gamma"], params["ln_beta"],
                                    negative_slope=None)

    # 4) 1-layer FFN (LeakyReLU 0.1) fused with SublayerConnection[1]
    #    (both sublayers share one SublayerConnection module -> same LN params)
    out = _pallas_linear_ln_residual(x1, params["w_ff_t"], params["b_ff"],
                                     x1, params["ln_gamma"], params["ln_beta"],
                                     negative_slope=0.1)
    return out.reshape(b, s, hidden)


# ---------------------------------------------------------------------------
# pure-JAX reference mirroring the torch module semantics
# ---------------------------------------------------------------------------
def _reference(x, mask, adj, dist, params, *, h, lam_att=0.33, lam_dist=0.33):
    b, s, hidden = x.shape
    dk = hidden // h
    lam_adj = 1.0 - lam_att - lam_dist
    hp = jax.lax.Precision.HIGHEST
    x2 = x.reshape(b * s, hidden)

    qkv = jnp.dot(x2, params["w_in_t"], precision=hp) + params["b_in"]
    qkv = jnp.transpose(qkv.reshape(b, s, h, dk), (0, 2, 1, 3))

    scores = jnp.einsum("bhqd,bhkd->bhqk", qkv, qkv, precision=hp) / math.sqrt(dk)
    scores = jnp.where(mask.reshape(b, 1, 1, s) == 0, -NEG_INF, scores)
    p_attn = jax.nn.softmax(scores, axis=-1)
    p_adj = (adj / (jnp.sum(adj, axis=-1, keepdims=True) + ATTN_EPS))[:, None]
    neg = jnp.where(mask.reshape(b, 1, s) == 0, -NEG_INF, -dist)
    p_dist = jax.nn.softmax(neg, axis=-1)[:, None]
    p = lam_att * p_attn + lam_dist * p_dist + lam_adj * p_adj
    att = jnp.einsum("bhqk,bhkd->bhqd", p, qkv, precision=hp)
    att2 = jnp.transpose(att, (0, 2, 1, 3)).reshape(b * s, hidden)

    def ln(y):
        mean = jnp.mean(y, axis=-1, keepdims=True)
        c = y - mean
        var = jnp.mean(c * c, axis=-1, keepdims=True)
        return c * jax.lax.rsqrt(var + LN_EPS) * params["ln_gamma"] + params["ln_beta"]

    y0 = jnp.dot(att2, params["w_out_t"], precision=hp) + params["b_out"]
    x1 = x2 + ln(y0)
    y1 = jnp.dot(x1, params["w_ff_t"], precision=hp) + params["b_ff"]
    y1 = jnp.where(y1 >= 0, y1, 0.1 * y1)
    out = x1 + ln(y1)
    return out.reshape(b, s, hidden)


if __name__ == "__main__":
    key = jax.random.PRNGKey(0)
    b, s, hidden, h = 2, 8, 128, 4          # small MAT config: 8 atoms, d_model=128, 4 heads

    keys = jax.random.split(key, 10)
    x = jax.random.normal(keys[0], (b, s, hidden), dtype=jnp.float32)
    adj = (jax.random.uniform(keys[1], (b, s, s)) > 0.5).astype(jnp.float32)
    dist = jax.random.uniform(keys[2], (b, s, s), minval=0.0, maxval=5.0)
    # padding mask: molecule 0 fully valid, molecule 1 has 2 padded atoms
    mask = jnp.ones((b, s), dtype=jnp.float32).at[1, 6:].set(0.0)

    wscale = 1.0 / math.sqrt(hidden)
    params = {
        "w_in_t":  jax.random.normal(keys[3], (hidden, hidden), jnp.float32) * wscale,
        "b_in":    jax.random.normal(keys[4], (hidden,), jnp.float32) * 0.1,
        "w_out_t": jax.random.normal(keys[5], (hidden, hidden), jnp.float32) * wscale,
        "b_out":   jax.random.normal(keys[6], (hidden,), jnp.float32) * 0.1,
        "w_ff_t":  jax.random.normal(keys[7], (hidden, hidden), jnp.float32) * wscale,
        "b_ff":    jax.random.normal(keys[8], (hidden,), jnp.float32) * 0.1,
        # nn.LayerNorm(encoder_hsize) default init (shared by both sublayers)
        "ln_gamma": jnp.ones((hidden,), jnp.float32),
        "ln_beta":  jnp.zeros((hidden,), jnp.float32),
    }

    out = mat_encoder_layer(x, mask, adj, dist, params, h=h)
    out = jax.block_until_ready(out)

    ref = _reference(x, mask, adj, dist, params, h=h)
    assert out.shape == x.shape and out.dtype == x.dtype
    assert jnp.allclose(out, ref, atol=2e-3, rtol=2e-3), (
        "mismatch vs reference: max |diff| = %f" % float(jnp.max(jnp.abs(out - ref))))

    print("KERNEL_OK")
</pallas_src>

<mosaic_0001>
module attributes {stable_mosaic.version = 11 : i64} {
  func.func @_mat_attention_kernel(%arg0: i32, %arg1: memref<1x8x128xf32, #tpu.memory_space<vmem>>, %arg2: memref<128x128xf32, #tpu.memory_space<vmem>>, %arg3: memref<1x128xf32, #tpu.memory_space<vmem>>, %arg4: memref<1x1x8xf32, #tpu.memory_space<vmem>>, %arg5: memref<1x8x8xf32, #tpu.memory_space<vmem>>, %arg6: memref<1x8x8xf32, #tpu.memory_space<vmem>>, %arg7: memref<1x8x128xf32, #tpu.memory_space<vmem>>) attributes {dimension_semantics = [#tpu.dimension_semantics<parallel>], iteration_bounds = array<i64: 2>, scalar_prefetch = 0 : i64, scratch_operands = 0 : i64, tpu.core_type = #tpu.core_type<tc>, window_params = [{transform_indices = @transform_0, window_bounds = array<i64: 1, 8, 128>}, {pipeline_mode = #tpu.pipeline_mode<synchronous>, transform_indices = @transform_1, window_bounds = array<i64: 128, 128>}, {pipeline_mode = #tpu.pipeline_mode<synchronous>, transform_indices = @transform_2, window_bounds = array<i64: 1, 128>}, {transform_indices = @transform_3, window_bounds = array<i64: 1, 1, 8>}, {transform_indices = @transform_4, window_bounds = array<i64: 1, 8, 8>}, {transform_indices = @transform_5, window_bounds = array<i64: 1, 8, 8>}, {transform_indices = @transform_6, window_bounds = array<i64: 1, 8, 128>}]} {
    %c0 = arith.constant 0 : index
    %c0_0 = arith.constant 0 : index
    %c0_1 = arith.constant 0 : index
    %0 = vector.load %arg1[%c0, %c0_0, %c0_1] : memref<1x8x128xf32, #tpu.memory_space<vmem>>, vector<1x8x128xf32>
    %1 = vector.shape_cast %0 : vector<1x8x128xf32> to vector<8x128xf32>
    %c0_2 = arith.constant 0 : index
    %c0_3 = arith.constant 0 : index
    %2 = vector.load %arg2[%c0_2, %c0_3] : memref<128x128xf32, #tpu.memory_space<vmem>>, vector<128x128xf32>
    %cst = arith.constant dense<0.000000e+00> : vector<8x128xf32>
    %3 = tpu.matmul %1, %2, %cst {dimension_numbers = #tpu.dot_dimension_numbers<[1], [0], [0], [1], [0, 0, 1, 1], [], []>} : vector<8x128xf32>, vector<128x128xf32>, vector<8x128xf32> -> vector<8x128xf32>
    %c0_4 = arith.constant 0 : index
    %c0_5 = arith.constant 0 : index
    %4 = vector.load %arg3[%c0_4, %c0_5] : memref<1x128xf32, #tpu.memory_space<vmem>>, vector<1x128xf32>
    %5 = vector.broadcast %4 : vector<1x128xf32> to vector<8x128xf32>
    %6 = arith.addf %3, %5 : vector<8x128xf32>
    %c0_6 = arith.constant 0 : index
    %c0_7 = arith.constant 0 : index
    %c0_8 = arith.constant 0 : index
    %7 = vector.load %arg4[%c0_6, %c0_7, %c0_8] : memref<1x1x8xf32, #tpu.memory_space<vmem>>, vector<1x1x8xf32>
    %8 = vector.shape_cast %7 : vector<1x1x8xf32> to vector<1x8xf32>
    %cst_9 = arith.constant 0.000000e+00 : f32
    %9 = vector.broadcast %cst_9 : f32 to vector<1x8xf32>
    %10 = arith.cmpf oeq, %8, %9 : vector<1x8xf32>
    %cst_10 = arith.constant -9.99999995E+11 : f32
    %cst_11 = arith.constant 0.000000e+00 : f32
    %11 = vector.broadcast %cst_10 : f32 to vector<1x8xf32>
    %12 = vector.broadcast %cst_11 : f32 to vector<1x8xf32>
    %13 = arith.select %10, %11, %12 : vector<1x8xi1>, vector<1x8xf32>
    %c0_12 = arith.constant 0 : index
    %c0_13 = arith.constant 0 : index
    %c0_14 = arith.constant 0 : index
    %14 = vector.load %arg5[%c0_12, %c0_13, %c0_14] : memref<1x8x8xf32, #tpu.memory_space<vmem>>, vector<1x8x8xf32>
    %15 = vector.shape_cast %14 : vector<1x8x8xf32> to vector<8x8xf32>
    %cst_15 = arith.constant dense<0.000000e+00> : vector<8xf32>
    %16 = vector.multi_reduction <add>, %15, %cst_15 [1] : vector<8x8xf32> to vector<8xf32>
    %17 = vector.shape_cast %16 : vector<8xf32> to vector<8x1xf32>
    %cst_16 = arith.constant 9.99999997E-7 : f32
    %18 = vector.broadcast %cst_16 : f32 to vector<8x1xf32>
    %19 = arith.addf %17, %18 : vector<8x1xf32>
    %20 = tpu.reciprocal %19 : vector<8x1xf32> -> vector<8x1xf32>
    %21 = vector.broadcast %20 : vector<8x1xf32> to vector<8x8xf32>
    %22 = arith.mulf %15, %21 : vector<8x8xf32>
    %c0_17 = arith.constant 0 : index
    %c0_18 = arith.constant 0 : index
    %c0_19 = arith.constant 0 : index
    %23 = vector.load %arg6[%c0_17, %c0_18, %c0_19] : memref<1x8x8xf32, #tpu.memory_space<vmem>>, vector<1x8x8xf32>
    %24 = vector.shape_cast %23 : vector<1x8x8xf32> to vector<8x8xf32>
    %25 = vector.broadcast %13 : vector<1x8xf32> to vector<8x8xf32>
    %26 = arith.subf %25, %24 : vector<8x8xf32>
    %cst_20 = arith.constant dense<0xFF800000> : vector<8xf32>
    %27 = vector.multi_reduction <maximumf>, %26, %cst_20 [1] : vector<8x8xf32> to vector<8xf32>
    %28 = vector.shape_cast %27 : vector<8xf32> to vector<8x1xf32>
    %29 = vector.broadcast %28 : vector<8x1xf32> to vector<8x8xf32>
    %30 = arith.subf %26, %29 : vector<8x8xf32>
    %31 = math.exp %30 : vector<8x8xf32>
    %cst_21 = arith.constant dense<0.000000e+00> : vector<8xf32>
    %32 = vector.multi_reduction <add>, %31, %cst_21 [1] : vector<8x8xf32> to vector<8xf32>
    %33 = vector.shape_cast %32 : vector<8xf32> to vector<8x1xf32>
    %34 = tpu.reciprocal %33 : vector<8x1xf32> -> vector<8x1xf32>
    %35 = vector.broadcast %34 : vector<8x1xf32> to vector<8x8xf32>
    %36 = arith.mulf %31, %35 : vector<8x8xf32>
    %cst_22 = arith.constant 3.300000e-01 : f32
    %37 = vector.broadcast %cst_22 : f32 to vector<8x8xf32>
    %38 = arith.mulf %37, %36 : vector<8x8xf32>
    %cst_23 = arith.constant 3.400000e-01 : f32
    %39 = vector.broadcast %cst_23 : f32 to vector<8x8xf32>
    %40 = arith.mulf %39, %22 : vector<8x8xf32>
    %41 = arith.addf %38, %40 : vector<8x8xf32>
    %42 = vector.extract_strided_slice %6 {offsets = [0, 0], sizes = [8, 32], strides = [1, 1]} : vector<8x128xf32> to vector<8x32xf32>
    %cst_24 = arith.constant dense<0.000000e+00> : vector<8x8xf32>
    %43 = tpu.matmul %42, %42, %cst_24 {dimension_numbers = #tpu.dot_dimension_numbers<[1], [1], [0], [0], [0, 0, 1, 0], [], []>} : vector<8x32xf32>, vector<8x32xf32>, vector<8x8xf32> -> vector<8x8xf32>
    %cst_25 = arith.constant 0.176776692 : f32
    %44 = vector.broadcast %cst_25 : f32 to vector<8x8xf32>
    %45 = arith.mulf %43, %44 : vector<8x8xf32>
    %46 = vector.broadcast %13 : vector<1x8xf32> to vector<8x8xf32>
    %47 = arith.addf %45, %46 : vector<8x8xf32>
    %cst_26 = arith.constant dense<0xFF800000> : vector<8xf32>
    %48 = vector.multi_reduction <maximumf>, %47, %cst_26 [1] : vector<8x8xf32> to vector<8xf32>
    %49 = vector.shape_cast %48 : vector<8xf32> to vector<8x1xf32>
    %50 = vector.broadcast %49 : vector<8x1xf32> to vector<8x8xf32>
    %51 = arith.subf %47, %50 : vector<8x8xf32>
    %52 = math.exp %51 : vector<8x8xf32>
    %cst_27 = arith.constant dense<0.000000e+00> : vector<8xf32>
    %53 = vector.multi_reduction <add>, %52, %cst_27 [1] : vector<8x8xf32> to vector<8xf32>
    %54 = vector.shape_cast %53 : vector<8xf32> to vector<8x1xf32>
    %55 = tpu.reciprocal %54 : vector<8x1xf32> -> vector<8x1xf32>
    %56 = vector.broadcast %55 : vector<8x1xf32> to vector<8x8xf32>
    %57 = arith.mulf %52, %56 : vector<8x8xf32>
    %cst_28 = arith.constant 3.300000e-01 : f32
    %58 = vector.broadcast %cst_28 : f32 to vector<8x8xf32>
    %59 = arith.mulf %58, %57 : vector<8x8xf32>
    %60 = arith.addf %59, %41 : vector<8x8xf32>
    %cst_29 = arith.constant dense<0.000000e+00> : vector<8x32xf32>
    %61 = tpu.matmul %60, %42, %cst_29 {dimension_numbers = #tpu.dot_dimension_numbers<[1], [0], [0], [1], [0, 0, 1, 1], [], []>} : vector<8x8xf32>, vector<8x32xf32>, vector<8x32xf32> -> vector<8x32xf32>
    %62 = vector.extract_strided_slice %6 {offsets = [0, 32], sizes = [8, 32], strides = [1, 1]} : vector<8x128xf32> to vector<8x32xf32>
    %cst_30 = arith.constant dense<0.000000e+00> : vector<8x8xf32>
    %63 = tpu.matmul %62, %62, %cst_30 {dimension_numbers = #tpu.dot_dimension_numbers<[1], [1], [0], [0], [0, 0, 1, 0], [], []>} : vector<8x32xf32>, vector<8x32xf32>, vector<8x8xf32> -> vector<8x8xf32>
    %cst_31 = arith.constant 0.176776692 : f32
    %64 = vector.broadcast %cst_31 : f32 to vector<8x8xf32>
    %65 = arith.mulf %63, %64 : vector<8x8xf32>
    %66 = vector.broadcast %13 : vector<1x8xf32> to vector<8x8xf32>
    %67 = arith.addf %65, %66 : vector<8x8xf32>
    %cst_32 = arith.constant dense<0xFF800000> : vector<8xf32>
    %68 = vector.multi_reduction <maximumf>, %67, %cst_32 [1] : vector<8x8xf32> to vector<8xf32>
    %69 = vector.shape_cast %68 : vector<8xf32> to vector<8x1xf32>
    %70 = vector.broadcast %69 : vector<8x1xf32> to vector<8x8xf32>
    %71 = arith.subf %67, %70 : vector<8x8xf32>
    %72 = math.exp %71 : vector<8x8xf32>
    %cst_33 = arith.constant dense<0.000000e+00> : vector<8xf32>
    %73 = vector.multi_reduction <add>, %72, %cst_33 [1] : vector<8x8xf32> to vector<8xf32>
    %74 = vector.shape_cast %73 : vector<8xf32> to vector<8x1xf32>
    %75 = tpu.reciprocal %74 : vector<8x1xf32> -> vector<8x1xf32>
    %76 = vector.broadcast %75 : vector<8x1xf32> to vector<8x8xf32>
    %77 = arith.mulf %72, %76 : vector<8x8xf32>
    %cst_34 = arith.constant 3.300000e-01 : f32
    %78 = vector.broadcast %cst_34 : f32 to vector<8x8xf32>
    %79 = arith.mulf %78, %77 : vector<8x8xf32>
    %80 = arith.addf %79, %41 : vector<8x8xf32>
    %cst_35 = arith.constant dense<0.000000e+00> : vector<8x32xf32>
    %81 = tpu.matmul %80, %62, %cst_35 {dimension_numbers = #tpu.dot_dimension_numbers<[1], [0], [0], [1], [0, 0, 1, 1], [], []>} : vector<8x8xf32>, vector<8x32xf32>, vector<8x32xf32> -> vector<8x32xf32>
    %82 = vector.extract_strided_slice %6 {offsets = [0, 64], sizes = [8, 32], strides = [1, 1]} : vector<8x128xf32> to vector<8x32xf32>
    %cst_36 = arith.constant dense<0.000000e+00> : vector<8x8xf32>
    %83 = tpu.matmul %82, %82, %cst_36 {dimension_numbers = #tpu.dot_dimension_numbers<[1], [1], [0], [0], [0, 0, 1, 0], [], []>} : vector<8x32xf32>, vector<8x32xf32>, vector<8x8xf32> -> vector<8x8xf32>
    %cst_37 = arith.constant 0.176776692 : f32
    %84 = vector.broadcast %cst_37 : f32 to vector<8x8xf32>
    %85 = arith.mulf %83, %84 : vector<8x8xf32>
    %86 = vector.broadcast %13 : vector<1x8xf32> to vector<8x8xf32>
    %87 = arith.addf %85, %86 : vector<8x8xf32>
    %cst_38 = arith.constant dense<0xFF800000> : vector<8xf32>
    %88 = vector.multi_reduction <maximumf>, %87, %cst_38 [1] : vector<8x8xf32> to vector<8xf32>
    %89 = vector.shape_cast %88 : vector<8xf32> to vector<8x1xf32>
    %90 = vector.broadcast %89 : vector<8x1xf32> to vector<8x8xf32>
    %91 = arith.subf %87, %90 : vector<8x8xf32>
    %92 = math.exp %91 : vector<8x8xf32>
    %cst_39 = arith.constant dense<0.000000e+00> : vector<8xf32>
    %93 = vector.multi_reduction <add>, %92, %cst_39 [1] : vector<8x8xf32> to vector<8xf32>
    %94 = vector.shape_cast %93 : vector<8xf32> to vector<8x1xf32>
    %95 = tpu.reciprocal %94 : vector<8x1xf32> -> vector<8x1xf32>
    %96 = vector.broadcast %95 : vector<8x1xf32> to vector<8x8xf32>
    %97 = arith.mulf %92, %96 : vector<8x8xf32>
    %cst_40 = arith.constant 3.300000e-01 : f32
    %98 = vector.broadcast %cst_40 : f32 to vector<8x8xf32>
    %99 = arith.mulf %98, %97 : vector<8x8xf32>
    %100 = arith.addf %99, %41 : vector<8x8xf32>
    %cst_41 = arith.constant dense<0.000000e+00> : vector<8x32xf32>
    %101 = tpu.matmul %100, %82, %cst_41 {dimension_numbers = #tpu.dot_dimension_numbers<[1], [0], [0], [1], [0, 0, 1, 1], [], []>} : vector<8x8xf32>, vector<8x32xf32>, vector<8x32xf32> -> vector<8x32xf32>
    %102 = vector.extract_strided_slice %6 {offsets = [0, 96], sizes = [8, 32], strides = [1, 1]} : vector<8x128xf32> to vector<8x32xf32>
    %cst_42 = arith.constant dense<0.000000e+00> : vector<8x8xf32>
    %103 = tpu.matmul %102, %102, %cst_42 {dimension_numbers = #tpu.dot_dimension_numbers<[1], [1], [0], [0], [0, 0, 1, 0], [], []>} : vector<8x32xf32>, vector<8x32xf32>, vector<8x8xf32> -> vector<8x8xf32>
    %cst_43 = arith.constant 0.176776692 : f32
    %104 = vector.broadcast %cst_43 : f32 to vector<8x8xf32>
    %105 = arith.mulf %103, %104 : vector<8x8xf32>
    %106 = vector.broadcast %13 : vector<1x8xf32> to vector<8x8xf32>
    %107 = arith.addf %105, %106 : vector<8x8xf32>
    %cst_44 = arith.constant dense<0xFF800000> : vector<8xf32>
    %108 = vector.multi_reduction <maximumf>, %107, %cst_44 [1] : vector<8x8xf32> to vector<8xf32>
    %109 = vector.shape_cast %108 : vector<8xf32> to vector<8x1xf32>
    %110 = vector.broadcast %109 : vector<8x1xf32> to vector<8x8xf32>
    %111 = arith.subf %107, %110 : vector<8x8xf32>
    %112 = math.exp %111 : vector<8x8xf32>
    %cst_45 = arith.constant dense<0.000000e+00> : vector<8xf32>
    %113 = vector.multi_reduction <add>, %112, %cst_45 [1] : vector<8x8xf32> to vector<8xf32>
    %114 = vector.shape_cast %113 : vector<8xf32> to vector<8x1xf32>
    %115 = tpu.reciprocal %114 : vector<8x1xf32> -> vector<8x1xf32>
    %116 = vector.broadcast %115 : vector<8x1xf32> to vector<8x8xf32>
    %117 = arith.mulf %112, %116 : vector<8x8xf32>
    %cst_46 = arith.constant 3.300000e-01 : f32
    %118 = vector.broadcast %cst_46 : f32 to vector<8x8xf32>
    %119 = arith.mulf %118, %117 : vector<8x8xf32>
    %120 = arith.addf %119, %41 : vector<8x8xf32>
    %cst_47 = arith.constant dense<0.000000e+00> : vector<8x32xf32>
    %121 = tpu.matmul %120, %102, %cst_47 {dimension_numbers = #tpu.dot_dimension_numbers<[1], [0], [0], [1], [0, 0, 1, 1], [], []>} : vector<8x8xf32>, vector<8x32xf32>, vector<8x32xf32> -> vector<8x32xf32>
    %122 = tpu.concatenate %61, %81, %101, %121 in 1 : vector<8x32xf32>, vector<8x32xf32>, vector<8x32xf32>, vector<8x32xf32> -> vector<8x128xf32>
    %c0_48 = arith.constant 0 : index
    %c0_49 = arith.constant 0 : index
    %c0_50 = arith.constant 0 : index
    %123 = vector.load %arg7[%c0_48, %c0_49, %c0_50] : memref<1x8x128xf32, #tpu.memory_space<vmem>>, vector<1x8x128xf32>
    %124 = vector.shape_cast %123 : vector<1x8x128xf32> to vector<8x128xf32>
    %125 = vector.shape_cast %122 : vector<8x128xf32> to vector<1x8x128xf32>
    tpu.vector_store %arg7[%c0_48, %c0_49, %c0_50], %125 {strides = array<i32>} : memref<1x8x128xf32, #tpu.memory_space<vmem>>, vector<1x8x128xf32>,
    return
  }
  func.func @transform_0(%arg0: i32) -> (i32, i32, i32) {
    %c0_i32 = arith.constant 0 : i32
    %c0_i32_0 = arith.constant 0 : i32
    %c0_i32_1 = arith.constant 0 : i32
    return %arg0, %c0_i32, %c0_i32_0 : i32, i32, i32
  }
  func.func @transform_1(%arg0: i32) -> (i32, i32) {
    %c0_i32 = arith.constant 0 : i32
    %c0_i32_0 = arith.constant 0 : i32
    %c0_i32_1 = arith.constant 0 : i32
    return %c0_i32, %c0_i32_0 : i32, i32
  }
  func.func @transform_2(%arg0: i32) -> (i32, i32) {
    %c0_i32 = arith.constant 0 : i32
    %c0_i32_0 = arith.constant 0 : i32
    %c0_i32_1 = arith.constant 0 : i32
    return %c0_i32, %c0_i32_0 : i32, i32
  }
  func.func @transform_3(%arg0: i32) -> (i32, i32, i32) {
    %c0_i32 = arith.constant 0 : i32
    %c0_i32_0 = arith.constant 0 : i32
    %c0_i32_1 = arith.constant 0 : i32
    return %arg0, %c0_i32, %c0_i32_0 : i32, i32, i32
  }
  func.func @transform_4(%arg0: i32) -> (i32, i32, i32) {
    %c0_i32 = arith.constant 0 : i32
    %c0_i32_0 = arith.constant 0 : i32
    %c0_i32_1 = arith.constant 0 : i32
    return %arg0, %c0_i32, %c0_i32_0 : i32, i32, i32
  }
  func.func @transform_5(%arg0: i32) -> (i32, i32, i32) {
    %c0_i32 = arith.constant 0 : i32
    %c0_i32_0 = arith.constant 0 : i32
    %c0_i32_1 = arith.constant 0 : i32
    return %arg0, %c0_i32, %c0_i32_0 : i32, i32, i32
  }
  func.func @transform_6(%arg0: i32) -> (i32, i32, i32) {
    %c0_i32 = arith.constant 0 : i32
    %c0_i32_0 = arith.constant 0 : i32
    %c0_i32_1 = arith.constant 0 : i32
    return %arg0, %c0_i32, %c0_i32_0 : i32, i32, i32
  }
}

</mosaic_0001>

<bundles_post_ra>
// kernel: tpu_custom_call.1
= control target key start
LH: loop header
LB: loop body
LE: loop exit
PB: predicated region body
PF: predicated region fallthrough
CT: control target
= control target key end

     0   :  { %s1652_s0 = inlined_call_operand.hbm [shape: f32[2,8,128], index: 0, kind: input, shape index: {}]   ;;  %s1653_s1 = inlined_call_operand.hbm [shape: f32[128,128], index: 1, kind: input, shape index: {}]   ;;  %s1654_s2 = inlined_call_operand.hbm [shape: f32[1,128], index: 2, kind: input, shape index: {}]   ;;  %s1655_s3 = inlined_call_operand.vmem [shape: f32[2,1,8], index: 3, kind: input, shape index: {}]   ;;  %s1656_s4 = inlined_call_operand.hbm [shape: f32[2,8,8], index: 4, kind: input, shape index: {}]   ;;  %s1657_s5 = inlined_call_operand.hbm [shape: f32[2,8,8], index: 5, kind: input, shape index: {}]   ;;  %s1658_s6 = inlined_call_operand.hbm [shape: f32[2,8,128], index: 6, kind: output, shape index: {}]  }
   0x1   :  { %1665 = sst [smem:[#allocation20_spill]] %s1653_s1 }
   0x2   :  { %1666 = sst [smem:[#allocation21_spill]] %s1654_s2 }
   0x3   :  { %11 = vsyncpa [#allocation3], 0 }
   0x4   :  { %13 = vsyncpa [#allocation3 + $0x1], 0 }
   0x5   :  { %14 = vsyncpa [#allocation6], 0 }
   0x6   :  { %15 = vsyncpa [#allocation9], 0 }
   0x7   :  { %17 = vsyncpa [#allocation9 + $0x1], 0 }
   0x8   :  { %18 = vsyncpa [#allocation4], 0 }
   0x9   :  { %20 = vsyncpa [#allocation4 + $0x1], 0  ;;  %s1373_s21 = smov 0   ;;  %s1375_s22 = smov 0  }
   0xa   :  { %s1377_s23 = smov 0   ;;  %s1379_s24 = smov 0  }
   0xb LB: > { %1667 = sst [smem:[#allocation16_spill]] %s1328_s24  ;;  %s1397_s28 = sadd.s32 4294967295, %s1328_s24   ;;  %s1328_s24 = sphi %s1379_s24, %s1685_s24   ;;  %s1324_s23 = sphi %s1377_s23, %s1689_s23   ;;  %s1320_s22 = sphi %s1375_s22, %s1688_s22   ;;  %s1316_s21 = sphi %s1373_s21, %s1687_s21  }
   0xc   : > { %s1668_s1 = sld [smem:[#allocation20_spill]]  ;;  %p965_p0 = scmp.ge.s32.totalorder %s1328_s24, 1 }
   0xd   : > { %p1664_p1 = scmp.eq.s32.totalorder %s1397_s28, 0  ;;  %p203_p2 = scmp.lt.s32.totalorder %s1328_s24, 3 }
   0xe   : > { %s1330_s30 = smov [#allocation5]   ;;  %s1331_s9 = smov 128  }
   0xf   : > { %p1402_p3 = pnand %p965_p0, %p203_p2  ;;  %s216_s7 = sshll.u32 %s1330_s30, 4  ;;  %s217_s7 = int_to_ptr.vmem [resolvable:$true] %s216_s7 }
  0x10   : > { %s1332_s10 = smov 8   ;;  %s964_s11 = sadd.s32 4294967294, %s1328_s24  }
  0x11   : > { %p1014_p4 = pneg %p1402_p3  ;;  %s1419_s12 = sadd.s32 1, %s1328_s24  }
  0x12   : > { %s214_s27 = sshll.u32 %s1668_s1, 4  ;;  %1671 = sst [smem:[#allocation17_spill]] %s1419_s12  ;;  %s215_s27 = int_to_ptr.hbm [resolvable:$true] %s214_s27 }
  0x13   : > { %p1411_p6 = pnand %p1014_p4, %p1664_p1  ;;  %s33_s13 = sadd.s32 1, %s1324_s23 }
  0x14   : > { %s30_s14 = ssub.s32 %s1328_s24, %s1419_s12  ;;  %p40_p7 = scmp.ne.s32.totalorder %s1324_s23, %s1320_s22 }
  0x15   : > { %1017 = dma.hbm_to_vmem [thread:$0]  (!%p1411_p6), %s215_s27, 2048, %s217_s7, [#allocation6], %s1331_s9, %s1331_s9, %s1332_s10  }
  0x16   : > { %p31_p8 = scmp.eq.s32.totalorder %s30_s14, 0  ;;  %p41_p9 = scmp.eq.s32.totalorder %s1328_s24, 0 }
  0x17   : > { %p46_p10 = scmp.ne.s32.totalorder %s1320_s22, %s1316_s21  ;;  %p190_p11 = scmp.eq.s32.totalorder %s1397_s28, 1 }
  0x18   : > { %s1431_s15 = scalar_select %p31_p8, %s1324_s23, %s33_s13  }
  0x19   : > { %p42_p12 = por %p41_p9, %p40_p7  ;;  %p1435_p13 = por %p1664_p1, %p46_p10 }
  0x1a   : > { %1672 = sst [smem:[#allocation18_spill]] %s1431_s15  ;;  %p1439_p0 = por %p190_p11, %p40_p7 }
  0x1b   : > { %p196_p2 = scmp.eq.s32.totalorder %s964_s11, 1  ;;  %p1037_p4 = scmp.lt.s32.totalorder %s1328_s24, 2 }
  0x1c   : > { %s1659_s18 = sand.u32 1, %s1324_s23   ;;  %s1454_s25 = sshll.u32 %s1328_s24, 3 }
  0x1d   : > { %p1445_p5 = por %p196_p2, %p46_p10  ;;  %s1451_s20 = sshll.u32 %s1659_s18, 3 }
  0x1e   : > { %p1456_p8 = pnand %p1037_p4, %p42_p12  ;;  %s267_s27 = sand.u32 1, %s1328_s24  }
  0x1f   : > { %s1675_s19 = scalar_select %p1445_p5, 1, 0 }
  0x20   : > { %s275_s9 = scalar_lea.hbm %s1656_s4, %s1454_s25  ;;  %s271_s10 = scalar_lea.vmem [#allocation8], %s1451_s20 }
  0x21   : > { %1676 = sst [smem:[#allocation19_spill]] %s1675_s19  ;;  %s279_s11 = sshll.u32 %s271_s10, 4  ;;  %s280_s11 = int_to_ptr.vmem [resolvable:$true] %s279_s11 }
  0x22   : > { %s277_s13 = sshll.u32 %s275_s9, 4  ;;  %s1678_s2 = sld [smem:[#allocation21_spill]]  ;;  %s278_s13 = int_to_ptr.hbm [resolvable:$true] %s277_s13 }
  0x23   : > { %s1469_s15 = scalar_lea.sflag [#allocation9], %s267_s27  ;;  %s1134_s12 = sshra.s32 %s278_s13, 4  ;;  %s1135_s12 = int_to_ptr.hbm [resolvable:$true] %s1134_s12 }
  0x24   : > { %s1136_s19 = scalar_lea.hbm %s1135_s12, 8  ;;  %p1138_p9 = pneg %p1456_p8 }
  0x25   : > { %p1137_p7 = scmp.ne.s32.totalorder %s1135_s12, %s1136_s19  ;;  %s1141_s9 = scalar_lea.hbm %s1656_s4, 16 }
  0x26   : > { %p1142_p12 = scmp.lt.s32.totalorder %s1135_s12, %s1656_s4  ;;  %p1143_p2 = scmp.lt.s32.totalorder %s1141_s9, %s1136_s19 }
  0x27   : > { %p1139_p10 = pnand %p1138_p9, %p1137_p7 }
  0x28   : > { %s229_s1 = sshll.u32 %s1678_s2, 4  ;;  %p1144_p4 = por %p1143_p2, %p1142_p12  ;;  %s230_s1 = int_to_ptr.hbm [resolvable:$true] %s229_s1 }
  0x29   : > { %p1140_p11 = pneg %p1139_p10 }
  0x2b   : > { %p1145_p1 = pnand %p1144_p4, %p1140_p11 }
  0x2d   : > { %1148 = shalt.err (!%p1145_p1)
}
  0x2e   : > { %1027 = dma.hbm_to_vmem [thread:$0]  (!%p1456_p8), %s278_s13, 128, %s280_s11, %s1469_s15  }
  0x2f   : > { %s1333_s18 = smov [#allocation7]   ;;  %s250_s19 = scalar_lea.hbm %s1652_s0, %s1454_s25 }
  0x30   : > { %s231_s27 = sshll.u32 %s1333_s18, 4  ;;  %s246_s14 = scalar_lea.vmem [#allocation2], %s1451_s20  ;;  %s232_s27 = int_to_ptr.vmem [resolvable:$true] %s231_s27 }
  0x31   : > { %1020 = dma.hbm_to_vmem [thread:$0]  (!%p1411_p6), %s230_s1, 16, %s232_s27, [#allocation6]  }
  0x32   : > { %s254_s30 = sshll.u32 %s246_s14, 4  ;;  %s252_s7 = sshll.u32 %s250_s19, 4  ;;  %s255_s30 = int_to_ptr.vmem [resolvable:$true] %s254_s30  ;;  %s253_s7 = int_to_ptr.hbm [resolvable:$true] %s252_s7 }
  0x33   : > { %s1679_s9 = sand.u32 1, %s1324_s23   ;;  %s1194_s2 = sshra.s32 %s253_s7, 4  ;;  %s1195_s2 = int_to_ptr.hbm [resolvable:$true] %s1194_s2 }
  0x34   : > { %s243_s10 = scalar_lea.sflag [#allocation3], %s1679_s9  ;;  %s1196_s11 = scalar_lea.hbm %s1195_s2, 8 }
  0x35   : > { %p1197_p1 = scmp.ne.s32.totalorder %s1195_s2, %s1196_s11  ;;  %s1201_s13 = scalar_lea.hbm %s1652_s0, 16 }
  0x36   : > { %p1202_p6 = scmp.lt.s32.totalorder %s1195_s2, %s1652_s0  ;;  %p1203_p11 = scmp.lt.s32.totalorder %s1201_s13, %s1196_s11 }
  0x37   : > { %p1199_p7 = pnand %p1197_p1, %p1138_p9 }
  0x38   : > { %p1204_p12 = por %p1203_p11, %p1202_p6 }
  0x39   : > { %p1200_p10 = pneg %p1199_p7 }
  0x3b   : > { %p1205_p2 = pnand %p1204_p12, %p1200_p10 }
  0x3d   : > { %1208 = shalt.err (!%p1205_p2)
}
  0x3e   : > { %1024 = dma.hbm_to_vmem [thread:$0]  (!%p1456_p8), %s253_s7, 128, %s255_s30, %s243_s10  }
  0x3f   : > { %s294_s19 = scalar_lea.hbm %s1657_s5, %s1454_s25  ;;  %s290_s14 = scalar_lea.vmem [#allocation10], %s1451_s20 }
  0x40   : > { %s298_s9 = sshll.u32 %s290_s14, 4  ;;  %s296_s1 = sshll.u32 %s294_s19, 4  ;;  %s299_s9 = int_to_ptr.vmem [resolvable:$true] %s298_s9  ;;  %s297_s1 = int_to_ptr.hbm [resolvable:$true] %s296_s1 }
  0x41   : > { %s1224_s2 = sshra.s32 %s297_s1, 4  ;;  %s1231_s30 = scalar_lea.hbm %s1657_s5, 16  ;;  %s1225_s2 = int_to_ptr.hbm [resolvable:$true] %s1224_s2 }
  0x42   : > { %s1226_s11 = scalar_lea.hbm %s1225_s2, 8  ;;  %p1232_p10 = scmp.lt.s32.totalorder %s1225_s2, %s1657_s5 }
  0x43   : > { %p1227_p4 = scmp.ne.s32.totalorder %s1225_s2, %s1226_s11  ;;  %p1233_p6 = scmp.lt.s32.totalorder %s1231_s30, %s1226_s11 }
  0x45   : > { %p1229_p1 = pnand %p1227_p4, %p1138_p9  ;;  %p1234_p11 = por %p1233_p6, %p1232_p10 }
  0x47   : > { %p1230_p7 = pneg %p1229_p1 }
  0x49   : > { %p1235_p12 = pnand %p1234_p11, %p1230_p7 }
  0x4b   : > { %1238 = shalt.err (!%p1235_p12)
}
  0x4c   : > { %1030 = dma.hbm_to_vmem [thread:$0]  (!%p1456_p8), %s297_s1, 128, %s299_s9, %s1469_s15  }
  0x4d   : > { %307 = sbr.rel (%p1402_p3) target bundleno = 1404 (0x57c), region = 44  ;;  %s1525_s20 = sand.u32 (!%p1402_p3), 1, %s1320_s22  }
  0x4e   : > { %s1528_s25 = sshll.u32 (!%p1402_p3), %s1525_s20, 3  ;;  %s310_s18 = scalar_lea.sflag (!%p1402_p3), [#allocation3], %s1525_s20 }
  0x4f   : > { %s313_s27 = scalar_lea.vmem (!%p1402_p3), [#allocation2], %s1528_s25 }
  0x52   : > { %1299 = dma.done.wait (%p1435_p13), %s310_s18, 128  }
  0x53   : > { %1301 = vsyncadd (%p1435_p13), %s310_s18, 4294967168  ;;  %p1680_p8 = scmp.eq.s32.totalorder %s1397_s28, 0 }
  0x55   : > { %1303 = dma.done.wait (%p1680_p8), [#allocation6], 2064   ;;  %p1681_p3 = pmov %p1680_p8 }
  0x56   : > { %s329_s29 = sand.u32 1, %s1397_s28   ;;  %s333_s26 = scalar_lea.vmem [#allocation8], %s1528_s25 }
  0x57   : > { %1305 = vsyncadd (%p1681_p3), [#allocation6], 4294965232  ;;  %s330_s15 = scalar_lea.sflag [#allocation9], %s329_s29 }
  0x58   : > { %1307 = dma.done.wait (%p1435_p13), %s330_s15, 256  }
  0x59   : > { %1309 = vsyncadd (%p1435_p13), %s330_s15, 4294967040  ;;  %v405_v0 = vld [vmem:[#allocation5 + $0x78] sm:$0xff]  ;;  %v404_v1 = vld [vmem:[#allocation5 + $0x70] sm:$0xff]  ;;  %vm486_vm0 = vcmask 261120   ;;  %s1334_s16 = smov 96   ;;  %p386_p13 = scmp.lt.s32.totalorder %s1397_s28, 1 }
  0x5a   : > { %410 = vmatpush.msra.mxu0 %v405_v0  ;;  %v403_v2 = vld [vmem:[#allocation5 + $0x68] sm:$0xff]  ;;  %v402_v3 = vld [vmem:[#allocation5 + $0x60] sm:$0xff]  ;;  %v401_v4 = vld [vmem:[#allocation5 + $0x58] sm:$0xff]  ;;  %v1335_v21 = vmov 0.0   ;;  %s343_s9 = scalar_lea.vmem [#allocation10], %s1528_s25  ;;  %vm434_vm2 = vcmask 64512  }
  0x5b   : > { %v400_v5 = vld [vmem:[#allocation5 + $0x50] sm:$0xff]  ;;  %v399_v6 = vld [vmem:[#allocation5 + $0x48] sm:$0xff]  ;;  %v398_v7 = vld [vmem:[#allocation5 + $0x40] sm:$0xff]  ;;  %s387_s24 = scalar_select %p386_p13, %s1397_s28, 1 }
  0x5c   : > { %411 = vmatpush.msra.mxu0 %v404_v1  ;;  %v397_v8 = vld [vmem:[#allocation5 + $0x38] sm:$0xff]  ;;  %v396_v9 = vld [vmem:[#allocation5 + $0x30] sm:$0xff]  ;;  %v395_v10 = vld [vmem:[#allocation5 + $0x28] sm:$0xff]  ;;  %s1336_s1 = smov 64   ;;  %s1337_s2 = smov 32  }
  0x5d   : > { %v394_v11 = vld [vmem:[#allocation5 + $0x20] sm:$0xff]  ;;  %v393_v12 = vld [vmem:[#allocation5 + $0x18] sm:$0xff]  ;;  %v392_v13 = vld [vmem:[#allocation5 + $0x10] sm:$0xff]  ;;  %s388_s14 = scalar_lea.vmem %s1655_s3, %s387_s24  ;;  %s995_s11 = sshll.u32 %s1397_s28, 3 }
  0x5e   : > { %412 = vmatpush.msra.mxu0 %v403_v2  ;;  %v391_v14 = vld [vmem:[#allocation5 + $0x8] sm:$0xff]  ;;  %v390_v15 = vld [vmem:[#allocation5] sm:$0xff]  ;;  %v389_v16 = vld [vmem:[%s313_s27] sm:$0xff]  ;;  %s818_s30 = scalar_lea.hbm %s1658_s6, %s995_s11  ;;  %s385_s7 = scalar_lea.vmem [#allocation11], %s1528_s25 }
  0x5f   : > { %v1081_v17 = vld [vmem:[#allocation7] ss:$0 sm:$0xff]  ;;  %v430_v20 = vld [vmem:[%s388_s14] sm:$0x1]  ;;  %s820_s10 = sshll.u32 %s385_s7, 4  ;;  %s822_s18 = sshll.u32 %s818_s30, 4  ;;  %s821_s10 = int_to_ptr.vmem [resolvable:$true] %s820_s10  ;;  %s823_s18 = int_to_ptr.hbm [resolvable:$true] %s822_s18 }
  0x60   : > { %413 = vmatpush.msra.mxu0 %v402_v3  ;;  %vm431_vm1 = vcmp.eq.f32.partialorder %v430_v20, 0.0  ;;  %v454_v24 = vld [vmem:[%s343_s9] sm:$0xff]  ;;  %v1571_v30 = vld [vmem:[%s333_s26] sm:$0xff]  ;;  %s808_s28 = scalar_lea.sflag [#allocation4], %s1525_s20  ;;  %s1268_s27 = sshra.s32 %s823_s18, 4  ;;  %s1269_s27 = int_to_ptr.hbm [resolvable:$true] %s1268_s27 }
  0x61   : > { %v432_v22 = vsel %vm431_vm1, -1e+12, %v1335_v21  ;;  %v435_v32 = vsel %vm434_vm2, %v1571_v30, 0.0  ;;  %s1270_s29 = scalar_lea.hbm %s1269_s27, 8  ;;  %s1274_s26 = scalar_lea.hbm %s1658_s6, 16 }
  0x62   : > { %414 = vmatpush.msra.mxu0 %v401_v4  ;;  %v1562_v23 = vperm.slane %v432_v22, 0  ;;  %436 = vadd.xlane.f32.xlu2 %v435_v32  ;;  %p1271_p9 = scmp.ne.s32.totalorder %s1269_s27, %s1270_s29  ;;  %p1275_p1 = scmp.lt.s32.totalorder %s1269_s27, %s1658_s6 }
  0x63   : > { %p1276_p7 = scmp.lt.s32.totalorder %s1274_s26, %s1270_s29 }
  0x64   : > { %415 = vmatpush.msra.mxu0 %v400_v5  ;;  %v458_v25 = vsub.f32 %v1562_v23, %v454_v24  ;;  %p1272_p2 = pnand %p1271_p9, %p1439_p0 }
  0x65   : > { %p1277_p10 = por %p1276_p7, %p1275_p1 }
  0x66   : > { %416 = vmatpush.msra.mxu0 %v399_v6  ;;  %v459_v26 = vsel %vm434_vm2, %v458_v25, -inf  ;;  %p1273_p4 = pneg %p1272_p2 }
  0x68   : > { %417 = vmatpush.msra.mxu0 %v398_v7  ;;  %p1278_p6 = pnand %p1277_p10, %p1273_p4 }
  0x6a   : > { %418 = vmatpush.msra.mxu0 %v397_v8 }
  0x6c   : > { %419 = vmatpush.msra.mxu0 %v396_v9 }
  0x6e   : > { %420 = vmatpush.msra.mxu0 %v395_v10 }
  0x70   : > { %421 = vmatpush.msra.mxu0 %v394_v11 }
  0x72   : > { %422 = vmatpush.msra.mxu0 %v393_v12 }
  0x74   : > { %423 = vmatpush.msra.mxu0 %v392_v13 }
  0x76   : > { %424 = vmatpush.msra.mxu0 %v391_v14 }
  0x78   : > { %425 = vmatpush.msra.mxu0 %v390_v15 }
  0x79   : > { %426 = vmatmul.f32.vlgmr.msra.gmra.mxu0 %v389_v16 }
  0xd5   : > { %v437_v48 = vpop.xlane.xlu2 %436 }
  0xd6   : > { %v438_v49 = vadd.f32 1e-06, %v437_v48 }
  0xd8   : > { %vm444_vm5 = vweird.f32 %v438_v49  ;;  %v450_v0 = vand.u32 2147483648, %v438_v49  ;;  %v448_v4 = vand.u32 2147483647, %v438_v49 }
  0xda   : > { %v451_v8 = vor.u32 1.1754944e-38, %v450_v0  ;;  %vm449_vm10 = vcmp.eq.f32.partialorder %v448_v4, 8.507059e+37 }
  0xf6   : > { %v427_v18 = vpop.f32.mrf.mxu0 }
  0xf7   : > { %v1548_v19 = vadd.f32 %v1081_v17, %v427_v18 }
  0xf9   : > { %561 = vrot.lane.b32.xlu0 %v1548_v19, %s1334_s16  ;;  %982 = vmatpush.xpose.msk.msra.mxu1 %vm486_vm0, %v1548_v19 }
  0xfa   : > { %556 = vmatpush.msra.mxu2 %v1548_v19 }
  0xfc   : > { %983 = vmatmul.msk.f32.vlgmr.msra.gmra.mxu1 %vm486_vm0, %v1548_v19 }
 0x123   : > { %460 = vmax.xlane.f32.xlu0 %v459_v26 }
 0x16b   : > { %v562_v27 = vpop.permute.xlu0 %561 }
 0x16c   : > { %985 = vmatpush.xpose.msk.msra.mxu3 %vm486_vm0, %v562_v27  ;;  %632 = vmatpush.msrb.mxu2 %v562_v27 }
 0x16f   : > { %986 = vmatmul.msk.f32.vlgmr.msra.gmra.mxu3 %vm486_vm0, %v562_v27 }
 0x179   : > { %v507_v28 = vpop.f32.mrf.mxu1 }
 0x17a   : > { %v510_v29 = vmul.f32 0.17677669, %v507_v28 }
 0x17c   : > { %v511_v31 = vadd.f32 %v510_v29, %v1562_v23 }
 0x17e   : > { %v512_v33 = vsel %vm434_vm2, %v511_v31, -inf }
 0x17f   : > { %513 = vmax.xlane.f32.xlu1 %v512_v33 }
 0x196   : > { %v461_v34 = vpop.xlane.xlu0 %460 }
 0x197   : > { %v462_v35 = vsub.f32 %v458_v25, %v461_v34 }
 0x199   : > { %v463_v36 = vmul.f32 1.442695, %v462_v35 }
 0x19b   : > { %1082 = vpow2.f32 %v463_v36 }
 0x1a1   : > { %v1083_v37 = vpop.eup %1082 }
 0x1a2   : > { %v465_v38 = vsel %vm434_vm2, %v1083_v37, 0.0 }
 0x1a3   : > { %466 = vadd.xlane.f32.xlu2 %v465_v38 }
 0x1f2   : > { %v582_v39 = vpop.f32.mrf.mxu3  ;;  %v514_v40 = vpop.xlane.xlu1 %513 }
 0x1f3   : > { %v585_v41 = vmul.f32 0.17677669, %v582_v39  ;;  %v515_v42 = vsub.f32 %v511_v31, %v514_v40 }
 0x1f5   : > { %v516_v43 = vmul.f32 1.442695, %v515_v42  ;;  %v586_v44 = vadd.f32 %v585_v41, %v1562_v23 }
 0x1f7   : > { %1084 = vpow2.f32 %v516_v43  ;;  %v587_v45 = vsel %vm434_vm2, %v586_v44, -inf }
 0x1f8   : > { %588 = vmax.xlane.f32.xlu1 %v587_v45 }
 0x1fd   : > { %v1580_v46 = vpop.eup %1084 }
 0x1fe   : > { %v518_v47 = vsel %vm434_vm2, %v1580_v46, 0.0 }
 0x200   : > { %519 = vadd.xlane.f32.xlu1 %v518_v47 }
 0x216   : > { %v467_v50 = vpop.xlane.xlu2 %466 }
 0x217   : > { %1086 = vrcp.f32 %v467_v50  ;;  %vm473_vm3 = vweird.f32 %v467_v50  ;;  %v479_v62 = vand.u32 2147483648, %v467_v50  ;;  %v477_v2 = vand.u32 2147483647, %v467_v50 }
 0x218   : > { %1088 = vrcp.f32 %v438_v49 }
 0x219   : > { %637 = vrot.lane.b32.xlu1 %v1548_v19, %s1336_s1  ;;  %v480_v6 = vor.u32 1.1754944e-38, %v479_v62  ;;  %vm478_vm9 = vcmp.eq.f32.partialorder %v477_v2, 8.507059e+37 }
 0x21d   : > { %v1087_v51 = vpop.eup %1086 }
 0x21e   : > { %v1089_v52 = vpop.eup %1088  ;;  %v469_v53 = vmul.f32 %v1087_v51, %v467_v50  ;;  %vm474_vm4 = vweird.f32 %v1087_v51 }
 0x21f   : > { %v440_v54 = vmul.f32 %v1089_v52, %v438_v49  ;;  %vm445_vm6 = vweird.f32 %v1089_v52  ;;  %vm475_vm7 = vmor %vm473_vm3, %vm474_vm4 }
 0x220   : > { %v470_v56 = vsub.f32 1.0, %v469_v53  ;;  %vm446_vm8 = vmor %vm444_vm5, %vm445_vm6 }
 0x221   : > { %v441_v58 = vsub.f32 1.0, %v440_v54 }
 0x222   : > { %v471_v60 = vmul.f32 %v1087_v51, %v470_v56 }
 0x223   : > { %v442_v61 = vmul.f32 %v1089_v52, %v441_v58 }
 0x224   : > { %v472_v1 = vadd.f32 %v1087_v51, %v471_v60 }
 0x225   : > { %v443_v3 = vadd.f32 %v1089_v52, %v442_v61 }
 0x226   : > { %v476_v9 = vsel %vm475_vm7, %v1087_v51, %v472_v1 }
 0x227   : > { %v447_v10 = vsel %vm446_vm8, %v1089_v52, %v443_v3  ;;  %v481_v12 = vsel %vm478_vm9, %v480_v6, %v476_v9 }
 0x228   : > { %v452_v14 = vsel %vm449_vm10, %v451_v8, %v447_v10  ;;  %v482_v16 = vmul.f32 %v1083_v37, %v481_v12 }
 0x229   : > { %v453_v21 = vmul.f32 %v452_v14, %v1571_v30 }
 0x22a   : > { %v483_v25 = vmul.f32 0.33, %v482_v16 }
 0x22b   : > { %v484_v26 = vmul.f32 0.34, %v453_v21 }
 0x22d   : > { %v1589_v31 = vadd.f32 %v484_v26, %v483_v25 }
 0x26b   : > { %v589_v55 = vpop.xlane.xlu1 %588 }
 0x26c   : > { %v590_v57 = vsub.f32 %v586_v44, %v589_v55 }
 0x26e   : > { %v591_v59 = vmul.f32 1.442695, %v590_v57 }
 0x270   : > { %1090 = vpow2.f32 %v591_v59 }
 0x273   : > { %v520_v63 = vpop.xlane.xlu1 %519 }
 0x274   : > { %1092 = vrcp.f32 %v520_v63  ;;  %v532_v17 = vand.u32 2147483648, %v520_v63  ;;  %v530_v20 = vand.u32 2147483647, %v520_v63  ;;  %vm526_vm12 = vweird.f32 %v520_v63 }
 0x276   : > { %v1091_v5 = vpop.eup %1090  ;;  %v533_v24 = vor.u32 1.1754944e-38, %v532_v17  ;;  %vm531_vm14 = vcmp.eq.f32.partialorder %v530_v20, 8.507059e+37 }
 0x277   : > { %v593_v7 = vsel %vm434_vm2, %v1091_v5, 0.0 }
 0x278   : > { %594 = vadd.xlane.f32.xlu2 %v593_v7 }
 0x27a   : > { %v1093_v11 = vpop.eup %1092 }
 0x27b   : > { %v522_v13 = vmul.f32 %v1093_v11, %v520_v63  ;;  %vm527_vm11 = vweird.f32 %v1093_v11 }
 0x27c   : > { %vm528_vm13 = vmor %vm526_vm12, %vm527_vm11 }
 0x27d   : > { %v523_v15 = vsub.f32 1.0, %v522_v13 }
 0x27f   : > { %v524_v18 = vmul.f32 %v1093_v11, %v523_v15 }
 0x281   : > { %v525_v22 = vadd.f32 %v1093_v11, %v524_v18 }
 0x283   : > { %v529_v27 = vsel %vm528_vm13, %v1093_v11, %v525_v22  ;;  %vm802_vm13 = vcmask 523264  }
 0x284   : > { %v534_v28 = vsel %vm531_vm14, %v533_v24, %v529_v27 }
 0x285   : > { %v535_v29 = vmul.f32 %v1580_v46, %v534_v28 }
 0x287   : > { %v536_v32 = vmul.f32 0.33, %v535_v29 }
 0x289   : > { %v537_v33 = vadd.f32 %v536_v32, %v1589_v31 }
 0x28b   : > { %984 = vmatmul.msk.f32.vlgmr.msra.gmra.mxu2 %vm434_vm2, %v537_v33  ;;  %v638_v34 = vpop.permute.xlu1 %637 }
 0x28c   : > { %988 = vmatpush.xpose.msk.msrb.mxu1 %vm486_vm0, %v638_v34  ;;  %708 = vmatpush.msrb.mxu3 %v638_v34 }
 0x28f   : > { %989 = vmatmul.msk.f32.vlgmr.msrb.gmra.mxu1 %vm486_vm0, %v638_v34 }
 0x290   : > { %713 = vrot.lane.b32.xlu2 %v1548_v19, %s1337_s2 }
 0x2eb   : > { %v595_v30 = vpop.xlane.xlu2 %594 }
 0x2ec   : > { %1094 = vrcp.f32 %v595_v30  ;;  %v607_v39 = vand.u32 2147483648, %v595_v30  ;;  %v605_v41 = vand.u32 2147483647, %v595_v30  ;;  %vm601_vm1 = vweird.f32 %v595_v30 }
 0x2ee   : > { %v608_v43 = vor.u32 1.1754944e-38, %v607_v39  ;;  %vm606_vm4 = vcmp.eq.f32.partialorder %v605_v41, 8.507059e+37 }
 0x2f2   : > { %v1095_v35 = vpop.eup %1094 }
 0x2f3   : > { %v597_v36 = vmul.f32 %v1095_v35, %v595_v30  ;;  %v714_v37 = vpop.permute.xlu2 %713  ;;  %vm602_vm15 = vweird.f32 %v1095_v35 }
 0x2f4   : > { %991 = vmatpush.xpose.msk.msra.mxu2 %vm486_vm0, %v714_v37  ;;  %784 = vmatpush.msra.mxu1 %v714_v37  ;;  %vm603_vm3 = vmor %vm601_vm1, %vm602_vm15 }
 0x2f5   : > { %v598_v38 = vsub.f32 1.0, %v597_v36 }
 0x2f7   : > { %v599_v40 = vmul.f32 %v1095_v35, %v598_v38 }
 0x2f9   : > { %v600_v42 = vadd.f32 %v1095_v35, %v599_v40 }
 0x2fb   : > { %v604_v44 = vsel %vm603_vm3, %v1095_v35, %v600_v42 }
 0x2fc   : > { %v609_v19 = vsel %vm606_vm4, %v608_v43, %v604_v44 }
 0x2fd   : > { %v610_v45 = vmul.f32 %v1091_v5, %v609_v19 }
 0x2ff   : > { %v611_v46 = vmul.f32 0.33, %v610_v45 }
 0x301   : > { %v612_v47 = vadd.f32 %v611_v46, %v1589_v31 }
 0x303   : > { %987 = vmatmul.msk.f32.vlgmr.msrb.gmra.mxu2 %vm434_vm2, %v612_v47 }
 0x30b   : > { %992 = vmatmul.msk.f32.vlgmr.msra.gmra.mxu2 %vm486_vm0, %v714_v37 }
 0x30c   : > { %v658_v48 = vpop.f32.mrf.mxu1 }
 0x30d   : > { %v661_v49 = vmul.f32 0.17677669, %v658_v48 }
 0x30e   : > { %v1603_v52 = vpop.f32.mrf.mxu2 }
 0x30f   : > { %v662_v50 = vadd.f32 %v661_v49, %v1562_v23 }
 0x311   : > { %v663_v51 = vsel %vm434_vm2, %v662_v50, -inf }
 0x312   : > { %664 = vmax.xlane.f32.xlu2 %v663_v51 }
 0x385   : > { %v665_v53 = vpop.xlane.xlu2 %664 }
 0x386   : > { %v666_v54 = vsub.f32 %v662_v50, %v665_v53  ;;  %v634_v55 = vpop.f32.mrf.mxu2 }
 0x388   : > { %v667_v56 = vmul.f32 1.442695, %v666_v54 }
 0x38a   : > { %1096 = vpow2.f32 %v667_v56 }
 0x38e   : > { %v734_v57 = vpop.f32.mrf.mxu2 }
 0x38f   : > { %v737_v58 = vmul.f32 0.17677669, %v734_v57 }
 0x390   : > { %v1097_v59 = vpop.eup %1096 }
 0x391   : > { %v738_v60 = vadd.f32 %v737_v58, %v1562_v23  ;;  %v669_v61 = vsel %vm434_vm2, %v1097_v59, 0.0 }
 0x392   : > { %670 = vadd.xlane.f32.xlu0 %v669_v61 }
 0x393   : > { %v739_v62 = vsel %vm434_vm2, %v738_v60, -inf }
 0x394   : > { %740 = vmax.xlane.f32.xlu1 %v739_v62 }
 0x405   : > { %v671_v63 = vpop.xlane.xlu0 %670 }
 0x406   : > { %1098 = vrcp.f32 %v671_v63  ;;  %v683_v6 = vand.u32 2147483648, %v671_v63  ;;  %v681_v8 = vand.u32 2147483647, %v671_v63  ;;  %vm677_vm6 = vweird.f32 %v671_v63 }
 0x407   : > { %v741_v0 = vpop.xlane.xlu1 %740 }
 0x408   : > { %v742_v1 = vsub.f32 %v738_v60, %v741_v0  ;;  %v684_v11 = vor.u32 1.1754944e-38, %v683_v6  ;;  %vm682_vm8 = vcmp.eq.f32.partialorder %v681_v8, 8.507059e+37 }
 0x40a   : > { %v743_v2 = vmul.f32 1.442695, %v742_v1 }
 0x40c   : > { %v1099_v3 = vpop.eup %1098  ;;  %1100 = vpow2.f32 %v743_v2 }
 0x40d   : > { %v673_v4 = vmul.f32 %v1099_v3, %v671_v63  ;;  %vm678_vm5 = vweird.f32 %v1099_v3 }
 0x40e   : > { %vm679_vm7 = vmor %vm677_vm6, %vm678_vm5 }
 0x40f   : > { %v674_v5 = vsub.f32 1.0, %v673_v4 }
 0x411   : > { %v675_v7 = vmul.f32 %v1099_v3, %v674_v5 }
 0x412   : > { %v1101_v23 = vpop.eup %1100 }
 0x413   : > { %v676_v9 = vadd.f32 %v1099_v3, %v675_v7  ;;  %v745_v10 = vsel %vm434_vm2, %v1101_v23, 0.0 }
 0x414   : > { %746 = vadd.xlane.f32.xlu0 %v745_v10 }
 0x415   : > { %v680_v12 = vsel %vm679_vm7, %v1099_v3, %v676_v9 }
 0x416   : > { %v685_v13 = vsel %vm682_vm8, %v684_v11, %v680_v12 }
 0x417   : > { %v686_v14 = vmul.f32 %v1097_v59, %v685_v13 }
 0x419   : > { %v687_v15 = vmul.f32 0.33, %v686_v14 }
 0x41b   : > { %v688_v16 = vadd.f32 %v687_v15, %v1589_v31 }
 0x41d   : > { %990 = vmatmul.msk.f32.vlgmr.msrb.gmra.mxu3 %vm434_vm2, %v688_v16 }
 0x428   : > { %790 = vrot.lane.b32.xlu0 %v634_v55, %s1337_s2 }
 0x487   : > { %v747_v17 = vpop.xlane.xlu0 %746 }
 0x488   : > { %1102 = vrcp.f32 %v747_v17  ;;  %v759_v22 = vand.u32 2147483648, %v747_v17  ;;  %v757_v25 = vand.u32 2147483647, %v747_v17  ;;  %vm753_vm10 = vweird.f32 %v747_v17 }
 0x48a   : > { %v760_v27 = vor.u32 1.1754944e-38, %v759_v22  ;;  %vm758_vm12 = vcmp.eq.f32.partialorder %v757_v25, 8.507059e+37 }
 0x48e   : > { %v1103_v18 = vpop.eup %1102 }
 0x48f   : > { %v749_v20 = vmul.f32 %v1103_v18, %v747_v17  ;;  %vm754_vm9 = vweird.f32 %v1103_v18 }
 0x490   : > { %vm755_vm11 = vmor %vm753_vm10, %vm754_vm9 }
 0x491   : > { %v750_v21 = vsub.f32 1.0, %v749_v20 }
 0x493   : > { %v751_v24 = vmul.f32 %v1103_v18, %v750_v21 }
 0x495   : > { %v752_v26 = vadd.f32 %v1103_v18, %v751_v24 }
 0x497   : > { %v756_v28 = vsel %vm755_vm11, %v1103_v18, %v752_v26 }
 0x498   : > { %v761_v29 = vsel %vm758_vm12, %v760_v27, %v756_v28 }
 0x499   : > { %v762_v32 = vmul.f32 %v1101_v23, %v761_v29 }
 0x49a   : > { %v791_v36 = vpop.permute.xlu0 %790 }
 0x49b   : > { %v763_v33 = vmul.f32 0.33, %v762_v32 }
 0x49d   : > { %v764_v34 = vadd.f32 %v763_v33, %v1589_v31  ;;  %v801_v31 = vsel %vm486_vm0, %v1603_v52, %v791_v36 }
 0x49f   : > { %993 = vmatmul.msk.f32.vlgmr.msra.gmra.mxu1 %vm434_vm2, %v764_v34  ;;  %vm804_vm2 = vcmask 785408  }
 0x4a0   : > { %v710_v30 = vpop.f32.mrf.mxu3 }
 0x4a1   : > { %794 = vrot.lane.b32.xlu0 %v710_v30, %s1336_s1 }
 0x513   : > { %v795_v37 = vpop.permute.xlu0 %794 }
 0x514   : > { %v803_v38 = vsel %vm802_vm13, %v801_v31, %v795_v37 }
 0x51c   : > { %v786_v35 = vpop.f32.mrf.mxu1 }
 0x51d   : > { %798 = vrot.lane.b32.xlu2 %v786_v35, %s1334_s16 }
 0x577   : > { %v799_v39 = vpop.permute.xlu2 %798 }
 0x578   : > { %v805_v40 = vsel %vm804_vm2, %v803_v38, %v799_v39 }
 0x579   : > { %806 = vst [vmem:[%s385_s7] sm:$0xff] %v805_v40 }
 0x57a   : > { %1281 = shalt.err (!%p1278_p6)
}
 0x57b   : > { %1012 = dma.vmem_to_hbm [thread:$0]  (%p1439_p0), %s821_s10, 128, %s823_s18, %s808_s28  }
 0x57c PF: > { %s1683_s12 = sld [smem:[#allocation16_spill]]  ;;  %s834_s19 = sand.u32 1, %s1316_s21  }
 0x57d   : > { %s835_s14 = scalar_lea.sflag [#allocation4], %s834_s19 }
 0x582   : > { %p1684_p11 = scmp.ge.s32.totalorder %s1683_s12, 2 }
 0x584   : > { %p1032_p12 = pnand %p1684_p11, %p1445_p5 }
 0x586   : > { %p1033_p8 = pneg %p1032_p12 }
 0x588   : > { %1311 = dma.done.wait (%p1033_p8), %s835_s14, 128  }
 0x589   : > { %1313 = vsyncadd (%p1033_p8), %s835_s14, 4294967168  ;;  %s1685_s24 = sld [smem:[#allocation17_spill]]  ;;  %s1687_s21 = smov %s1320_s22 }
 0x58a   : > { %s1686_s9 = sld [smem:[#allocation18_spill]]  ;;  %s1688_s22 = smov %s1324_s23 }
 0x58f   : > { %p23_p3 = scmp.ge.s32.totalorder %s1685_s24, 4  }
 0x590   : > { %s1689_s23 = smov %s1686_s9 }
 0x591   :  { %25 = sbr.rel (!%p23_p3) target bundleno = 11 (0xb), region = 124 }
 0x596   :  { %841 = vsyncpa [#allocation3], 1 }
 0x597   :  { %843 = vsyncpa [#allocation3 + $0x1], 1 }
 0x598   :  { %844 = vsyncpa [#allocation6], 1 }
 0x599   :  { %845 = vsyncpa [#allocation9], 1 }
 0x59a   :  { %847 = vsyncpa [#allocation9 + $0x1], 1 }
 0x59b   :  { %848 = vsyncpa [#allocation4], 1 }
 0x59c   :  { %850 = vsyncpa [#allocation4 + $0x1], 1 }

</bundles_post_ra>
